<compile_context>
chip_gen: v7x
topology: tpu7x:2x2x1
jax: 0.10.0
libtpu: 0.0.40
codegen_flags: <defaults>
</compile_context>

<pallas_src>
import functools

import numpy as np
import jax
import jax.numpy as jnp
from jax.experimental import pallas as pl
from jax.experimental.pallas import tpu as pltpu


# ----------------------------------------------------------------------------
# Fused Pallas kernel
# ----------------------------------------------------------------------------
def _encoder2d_fused_kernel(*refs, n_blocks, K, eps):
    """Fused Encoder2D forward.  All data VMEM-resident; lane axis = M = B*H*W.

    refs layout:
      inputs : x (C_in, M) f32, masks (K, M) f32, pool (M, B*H*S) bf16,
               then per block i: w_i (C_out_i, K*C_in_i) bf16,
               gamma_i (C_out_i, 1) f32, beta_i (C_out_i, 1) f32
      outputs: o_0..o_{n-1} (C_out_i, M) f32, pooled (C_last, B*H*S) f32
    """
    n_in = 3 + 3 * n_blocks
    x_ref, masks_ref, pool_ref = refs[0], refs[1], refs[2]
    param_refs = refs[3:n_in]
    out_refs = refs[n_in:n_in + n_blocks]
    pooled_ref = refs[n_in + n_blocks]

    M = x_ref.shape[-1]
    pad = (K - 1) // 2
    inv_m = 1.0 / float(M)

    masks = masks_ref[...]                                 # (K, M), {0, 1}
    mask_rows = [masks[k:k + 1, :] for k in range(K)]      # hoisted out of the loop

    act = x_ref[...]                                       # (C_in, M) f32
    for i in range(n_blocks):                              # small static count -> unrolled
        w_ref = param_refs[3 * i]
        g_ref = param_refs[3 * i + 1]
        b_ref = param_refs[3 * i + 2]

        # K width taps via XLU lane rotations on the in-vreg activation.  Tap at
        # offset d = k - pad needs act[:, m + d]; pltpu.roll(act, shift=-d) gives it,
        # and the precomputed mask zeroes every lane whose source index falls outside
        # [0, W) of its own image row — including the rotation's wrap-around lanes at
        # m = 0 / m = M-1 — reproducing Conv2d 'zeros' padding exactly.
        rows = []
        for k in range(K):
            d = k - pad
            if d == 0:
                rows.append(act)
            else:
                shifted = pltpu.roll(act, shift=(-d) % M, axis=1)   # lane axis
                rows.append(shifted * mask_rows[k])
        xstack = jnp.concatenate(rows, axis=0).astype(jnp.bfloat16)  # (K*C_in, M)

        # Conv2d([1,K]) as ONE bf16 MXU matmul with f32 accumulation.
        # Conv bias intentionally omitted: the train-mode BatchNorm mean subtraction
        # below cancels any per-channel constant exactly.
        acc = jnp.dot(w_ref[...], xstack,
                      preferred_element_type=jnp.float32)            # (C_out, M) f32

        # Training-mode BatchNorm2d: one-pass batch stats + folded affine + ReLU.
        # (E[x^2] - mean^2 is marginally less stable than the two-pass form; fine in
        # f32 here since acc is near zero-mean post-conv, and eps=1e-5 guards rsqrt.)
        s1 = jnp.sum(acc, axis=1, keepdims=True)
        s2 = jnp.sum(acc * acc, axis=1, keepdims=True)
        mean = s1 * inv_m
        var = s2 * inv_m - mean * mean
        scale = g_ref[...] * jax.lax.rsqrt(var + eps)     # rsqrt -> EUP (free slot)
        shift = b_ref[...] - mean * scale
        y = jnp.maximum(acc * scale + shift, 0.0)         # BN affine + ReLU, 3 VPU ops

        out_refs[i][...] = y.astype(out_refs[i].dtype)
        act = y

    # adaptive_avg_pool2d over W, fused: (C_last, M) @ (M, B*H*S) block-diagonal
    # pooling matmul (bf16 operands, f32 accumulate); output stays lane-dense.
    pooled_ref[...] = jnp.dot(
        act.astype(jnp.bfloat16), pool_ref[...], preferred_element_type=jnp.float32
    ).astype(pooled_ref.dtype)


# ----------------------------------------------------------------------------
# Static helper matrices (built once in the wrapper, tiny)
# ----------------------------------------------------------------------------
def _adaptive_pool_matrix(W, S):
    """Column-stochastic (W, S) matrix reproducing torch adaptive_avg_pool2d bins."""
    P = np.zeros((W, S), np.float32)
    for s in range(S):
        start = (s * W) // S
        end = -((-(s + 1) * W) // S)  # ceil((s+1)*W/S)
        P[start:end, s] = 1.0 / (end - start)
    return P


def _block_diag_pool_matrix(n_rows, W, S):
    """(n_rows*W, n_rows*S) block-diagonal pooling matrix over the flattened axis."""
    P = _adaptive_pool_matrix(W, S)
    big = np.zeros((n_rows * W, n_rows * S), np.float32)
    for r in range(n_rows):
        big[r * W:(r + 1) * W, r * S:(r + 1) * S] = P
    return jnp.asarray(big)


def _width_boundary_masks(K, W, M):
    """(K, M) {0,1} masks: tap k valid iff (m % W) + (k - pad) stays inside [0, W)."""
    pad = (K - 1) // 2
    w_idx = np.arange(M) % W
    masks = np.zeros((K, M), np.float32)
    for k in range(K):
        d = k - pad
        masks[k] = ((w_idx + d >= 0) & (w_idx + d < W)).astype(np.float32)
    return jnp.asarray(masks)


# ----------------------------------------------------------------------------
# Wrapper
# ----------------------------------------------------------------------------
def encoder2d_forward(x_nchw, params, *, kernel_size, size_restriction, eps=1e-5):
    B, C_in, H, W = x_nchw.shape
    K = kernel_size
    S = size_restriction
    M = B * H * W
    n_blocks = len(params)
    c_outs = [int(p["w"].shape[0]) for p in params]
    C_last = c_outs[-1]

    # Lane-dense internal layout: channels on sublanes, flattened B*H*W on lanes.
    x_cm = jnp.transpose(x_nchw, (1, 0, 2, 3)).reshape(C_in, M).astype(jnp.float32)
    masks = _width_boundary_masks(K, W, M)                          # f32 {0,1}
    pool = _block_diag_pool_matrix(B * H, W, S).astype(jnp.bfloat16)

    kernel_inputs = [x_cm, masks, pool]
    flops = 0
    c_prev = C_in
    for p, co in zip(params, c_outs):
        # PyTorch conv weight (C_out, C_in, 1, K) -> (C_out, K*C_in), cols ordered (k, c_in).
        w_mat = jnp.transpose(p["w"][:, :, 0, :], (0, 2, 1)).reshape(co, K * c_prev)
        kernel_inputs += [
            w_mat.astype(jnp.bfloat16),
            p["gamma"].reshape(co, 1).astype(jnp.float32),
            p["beta"].reshape(co, 1).astype(jnp.float32),
        ]
        flops += 2 * co * (K * c_prev) * M + 8 * co * M
        c_prev = co
    flops += 2 * C_last * M * (B * H * S)

    out_shapes = tuple(
        jax.ShapeDtypeStruct((co, M), jnp.float32) for co in c_outs
    ) + (jax.ShapeDtypeStruct((C_last, B * H * S), jnp.float32),)

    def _nbytes(shape, dtype):
        return int(np.prod(shape)) * jnp.dtype(dtype).itemsize

    in_bytes = sum(_nbytes(a.shape, a.dtype) for a in kernel_inputs)
    out_bytes = sum(_nbytes(o.shape, o.dtype) for o in out_shapes)
    # VMEM limit sized from the real resident footprint (+2x headroom for the per-block
    # tap stack / accumulator temporaries), floored at 4 MiB, capped at the part size.
    vmem_limit = int(min(128 * 1024 * 1024,
                         max(4 * 1024 * 1024, 2 * (in_bytes + out_bytes) + (1 << 20))))

    fused = pl.pallas_call(
        functools.partial(_encoder2d_fused_kernel, n_blocks=n_blocks, K=K, eps=eps),
        out_shape=out_shapes,
        in_specs=[pl.BlockSpec(memory_space=pltpu.MemorySpace.VMEM)
                  for _ in kernel_inputs],
        out_specs=tuple(pl.BlockSpec(memory_space=pltpu.MemorySpace.VMEM)
                        for _ in out_shapes),
        compiler_params=pltpu.CompilerParams(vmem_limit_bytes=vmem_limit),
        cost_estimate=pl.CostEstimate(
            flops=int(flops),
            transcendentals=int(sum(c_outs)),       # one rsqrt per BN channel
            bytes_accessed=int(in_bytes + out_bytes),
        ),
    )
    results = fused(*kernel_inputs)
    block_outs, pooled_flat = results[:-1], results[-1]

    # Back to PyTorch's NCHW conventions (tiny XLA transposes; the heavy data path
    # stayed inside the single fused kernel above).
    outputs = [
        o.reshape(co, B, H, W).transpose(1, 0, 2, 3)
        for o, co in zip(block_outs, c_outs)
    ]
    pooled_nchw = pooled_flat.reshape(C_last, B, H, S).transpose(1, 0, 2, 3)
    # l = x.squeeze(1); l = l.view(l.shape[0], l.shape[-2], -1)
    # -> row-major reshape of the contiguous NCHW pooled tensor, exactly as torch does.
    l = pooled_nchw.reshape(B, H, C_last * S)
    return l, outputs


# ----------------------------------------------------------------------------
# Pure-JAX reference (train-mode BN).  MXU operands are pre-rounded to bf16 exactly
# like the kernel, so the comparison isolates kernel mechanics from bf16 rounding.
# ----------------------------------------------------------------------------
def _reference_forward(x_nchw, params, *, kernel_size, size_restriction, eps=1e-5):
    def _bf16(v):
        return v.astype(jnp.bfloat16).astype(jnp.float32)

    pad = (kernel_size - 1) // 2
    act = x_nchw.astype(jnp.float32)
    outputs = []
    for p in params:
        y = jax.lax.conv_general_dilated(
            _bf16(act), _bf16(p["w"]),
            window_strides=(1, 1), padding=((0, 0), (pad, pad)),
            dimension_numbers=("NCHW", "OIHW", "NCHW"))
        # conv bias omitted: cancelled exactly by the train-mode BN mean subtraction.
        mean = jnp.mean(y, axis=(0, 2, 3), keepdims=True)
        var = jnp.mean(jnp.square(y - mean), axis=(0, 2, 3), keepdims=True)
        y = (y - mean) * jax.lax.rsqrt(var + eps)
        y = y * p["gamma"].reshape(1, -1, 1, 1) + p["beta"].reshape(1, -1, 1, 1)
        y = jnp.maximum(y, 0.0)
        outputs.append(y)
        act = y
    B, C, H, W = act.shape
    S = size_restriction
    P = jnp.asarray(_adaptive_pool_matrix(W, S))
    pooled = jnp.einsum("bchw,ws->bchs", _bf16(act), _bf16(P))     # (B, C, H, S)
    l = pooled.reshape(B, H, C * S)   # == torch .view on the contiguous NCHW tensor
    return l, outputs


# ----------------------------------------------------------------------------
# Deterministic parameter construction (mirrors Encoder2D.__init__ wiring)
# ----------------------------------------------------------------------------
def init_params(key, in_channels, hc, kernel_size):
    n_conv = len(hc)
    # block -1: in_channels -> hc[0]; block i (i=0..n_conv-2): hc[i-1] -> hc[i]
    chain = [(in_channels, hc[0])] + [(hc[i - 1], hc[i]) for i in range(n_conv - 1)]
    params = []
    for (ci, co) in chain:
        key, k1, k2, k3, k4 = jax.random.split(key, 5)
        params.append(
            dict(
                w=0.1 * jax.random.normal(k1, (co, ci, 1, kernel_size), jnp.float32),
                b=0.1 * jax.random.normal(k2, (co,), jnp.float32),  # cancelled by train-mode BN
                gamma=1.0 + 0.1 * jax.random.normal(k3, (co,), jnp.float32),
                beta=0.1 * jax.random.normal(k4, (co,), jnp.float32),
            )
        )
    return params


if __name__ == "__main__":
    # Small config consistent with the module's forward.
    B, IN_C, Hh, Ww = 2, 4, 16, 16
    HC = [8, 8, 8]            # all equal (required by the module's own wiring)
    KERNEL_SIZE = 3
    SIZE_RESTRICTION = 4

    key = jax.random.PRNGKey(0)
    key, kx, kp = jax.random.split(key, 3)
    x = jax.random.normal(kx, (B, IN_C, Hh, Ww), jnp.float32)
    params = init_params(kp, IN_C, HC, KERNEL_SIZE)

    fwd = jax.jit(
        functools.partial(
            encoder2d_forward,
            kernel_size=KERNEL_SIZE,
            size_restriction=SIZE_RESTRICTION,
        )
    )
    l, outputs = fwd(x, params)
    jax.block_until_ready((l, outputs))

    assert l.shape == (B, Hh, HC[-1] * SIZE_RESTRICTION), l.shape     # (2, 16, 32)
    assert len(outputs) == len(HC)
    assert all(o.shape == (B, hc_i, Hh, Ww) for o, hc_i in zip(outputs, HC))
    assert bool(jnp.all(jnp.isfinite(l)))

    # Correctness vs. a pure-JAX reference of the module (covers the pltpu.roll + mask
    # tap construction, one-pass BN, folded affine and the fused pooling matmul).
    l_ref, outs_ref = _reference_forward(
        x, params, kernel_size=KERNEL_SIZE, size_restriction=SIZE_RESTRICTION)
    np.testing.assert_allclose(np.asarray(l), np.asarray(l_ref), rtol=2e-2, atol=2e-2)
    for o, o_ref in zip(outputs, outs_ref):
        np.testing.assert_allclose(np.asarray(o), np.asarray(o_ref), rtol=2e-2, atol=2e-2)

    print("KERNEL_OK")
</pallas_src>

<mosaic_0001>
module attributes {stable_mosaic.version = 11 : i64} {
  func.func @_encoder2d_fused_kernel(%arg0: memref<4x512xf32, #tpu.memory_space<vmem>>, %arg1: memref<3x512xf32, #tpu.memory_space<vmem>>, %arg2: memref<512x128xbf16, #tpu.memory_space<vmem>>, %arg3: memref<8x12xbf16, #tpu.memory_space<vmem>>, %arg4: memref<8x1xf32, #tpu.memory_space<vmem>>, %arg5: memref<8x1xf32, #tpu.memory_space<vmem>>, %arg6: memref<8x24xbf16, #tpu.memory_space<vmem>>, %arg7: memref<8x1xf32, #tpu.memory_space<vmem>>, %arg8: memref<8x1xf32, #tpu.memory_space<vmem>>, %arg9: memref<8x24xbf16, #tpu.memory_space<vmem>>, %arg10: memref<8x1xf32, #tpu.memory_space<vmem>>, %arg11: memref<8x1xf32, #tpu.memory_space<vmem>>, %arg12: memref<8x512xf32, #tpu.memory_space<vmem>>, %arg13: memref<8x512xf32, #tpu.memory_space<vmem>>, %arg14: memref<8x512xf32, #tpu.memory_space<vmem>>, %arg15: memref<8x128xf32, #tpu.memory_space<vmem>>) attributes {dimension_semantics = [], scalar_prefetch = 0 : i64, scratch_operands = 0 : i64, tpu.core_type = #tpu.core_type<tc>} {
    %c0 = arith.constant 0 : index
    %c0_0 = arith.constant 0 : index
    %0 = vector.load %arg1[%c0, %c0_0] : memref<3x512xf32, #tpu.memory_space<vmem>>, vector<3x512xf32>
    %1 = vector.extract_strided_slice %0 {offsets = [0, 0], sizes = [1, 512], strides = [1, 1]} : vector<3x512xf32> to vector<1x512xf32>
    %2 = vector.extract_strided_slice %0 {offsets = [2, 0], sizes = [1, 512], strides = [1, 1]} : vector<3x512xf32> to vector<1x512xf32>
    %c0_1 = arith.constant 0 : index
    %c0_2 = arith.constant 0 : index
    %3 = vector.load %arg0[%c0_1, %c0_2] : memref<4x512xf32, #tpu.memory_space<vmem>>, vector<4x512xf32>
    %c1_i32 = arith.constant 1 : i32
    %4 = tpu.dynamic_rotate %3 by %c1_i32 dim 1 : vector<4x512xf32>, i32 -> vector<4x512xf32>
    %5 = vector.broadcast %1 : vector<1x512xf32> to vector<4x512xf32>
    %6 = arith.mulf %4, %5 : vector<4x512xf32>
    %c511_i32 = arith.constant 511 : i32
    %7 = tpu.dynamic_rotate %3 by %c511_i32 dim 1 : vector<4x512xf32>, i32 -> vector<4x512xf32>
    %8 = vector.broadcast %2 : vector<1x512xf32> to vector<4x512xf32>
    %9 = arith.mulf %7, %8 : vector<4x512xf32>
    %10 = tpu.concatenate %6, %3, %9 in 0 : vector<4x512xf32>, vector<4x512xf32>, vector<4x512xf32> -> vector<12x512xf32>
    %11 = arith.truncf %10 : vector<12x512xf32> to vector<12x512xbf16>
    %c0_3 = arith.constant 0 : index
    %c0_4 = arith.constant 0 : index
    %12 = vector.load %arg3[%c0_3, %c0_4] : memref<8x12xbf16, #tpu.memory_space<vmem>>, vector<8x12xbf16>
    %cst = arith.constant dense<0.000000e+00> : vector<8x512xf32>
    %13 = tpu.matmul %12, %11, %cst {dimension_numbers = #tpu.dot_dimension_numbers<[1], [0], [0], [1], [0, 0, 1, 1], [], []>} : vector<8x12xbf16>, vector<12x512xbf16>, vector<8x512xf32> -> vector<8x512xf32>
    %cst_5 = arith.constant dense<0.000000e+00> : vector<8xf32>
    %14 = vector.multi_reduction <add>, %13, %cst_5 [1] : vector<8x512xf32> to vector<8xf32>
    %15 = vector.shape_cast %14 : vector<8xf32> to vector<8x1xf32>
    %16 = arith.mulf %13, %13 : vector<8x512xf32>
    %cst_6 = arith.constant dense<0.000000e+00> : vector<8xf32>
    %17 = vector.multi_reduction <add>, %16, %cst_6 [1] : vector<8x512xf32> to vector<8xf32>
    %18 = vector.shape_cast %17 : vector<8xf32> to vector<8x1xf32>
    %cst_7 = arith.constant 0.001953125 : f32
    %19 = vector.broadcast %cst_7 : f32 to vector<8x1xf32>
    %20 = arith.mulf %15, %19 : vector<8x1xf32>
    %cst_8 = arith.constant 0.001953125 : f32
    %21 = vector.broadcast %cst_8 : f32 to vector<8x1xf32>
    %22 = arith.mulf %18, %21 : vector<8x1xf32>
    %23 = arith.mulf %20, %20 : vector<8x1xf32>
    %24 = arith.subf %22, %23 : vector<8x1xf32>
    %c0_9 = arith.constant 0 : index
    %c0_10 = arith.constant 0 : index
    %25 = vector.load %arg4[%c0_9, %c0_10] : memref<8x1xf32, #tpu.memory_space<vmem>>, vector<8x1xf32>
    %cst_11 = arith.constant 9.99999974E-6 : f32
    %26 = vector.broadcast %cst_11 : f32 to vector<8x1xf32>
    %27 = arith.addf %24, %26 : vector<8x1xf32>
    %28 = math.rsqrt %27 : vector<8x1xf32>
    %29 = arith.mulf %25, %28 : vector<8x1xf32>
    %c0_12 = arith.constant 0 : index
    %c0_13 = arith.constant 0 : index
    %30 = vector.load %arg5[%c0_12, %c0_13] : memref<8x1xf32, #tpu.memory_space<vmem>>, vector<8x1xf32>
    %31 = arith.mulf %20, %29 : vector<8x1xf32>
    %32 = arith.subf %30, %31 : vector<8x1xf32>
    %33 = vector.broadcast %29 : vector<8x1xf32> to vector<8x512xf32>
    %34 = arith.mulf %13, %33 : vector<8x512xf32>
    %35 = vector.broadcast %32 : vector<8x1xf32> to vector<8x512xf32>
    %36 = arith.addf %34, %35 : vector<8x512xf32>
    %cst_14 = arith.constant 0.000000e+00 : f32
    %37 = vector.broadcast %cst_14 : f32 to vector<8x512xf32>
    %38 = arith.maximumf %36, %37 : vector<8x512xf32>
    %c0_15 = arith.constant 0 : index
    %c0_16 = arith.constant 0 : index
    %39 = vector.load %arg12[%c0_15, %c0_16] : memref<8x512xf32, #tpu.memory_space<vmem>>, vector<8x512xf32>
    tpu.vector_store %arg12[%c0_15, %c0_16], %38 {strides = array<i32>} : memref<8x512xf32, #tpu.memory_space<vmem>>, vector<8x512xf32>,
    %c1_i32_17 = arith.constant 1 : i32
    %40 = tpu.dynamic_rotate %38 by %c1_i32_17 dim 1 : vector<8x512xf32>, i32 -> vector<8x512xf32>
    %41 = vector.broadcast %1 : vector<1x512xf32> to vector<8x512xf32>
    %42 = arith.mulf %40, %41 : vector<8x512xf32>
    %c511_i32_18 = arith.constant 511 : i32
    %43 = tpu.dynamic_rotate %38 by %c511_i32_18 dim 1 : vector<8x512xf32>, i32 -> vector<8x512xf32>
    %44 = vector.broadcast %2 : vector<1x512xf32> to vector<8x512xf32>
    %45 = arith.mulf %43, %44 : vector<8x512xf32>
    %46 = tpu.concatenate %42, %38, %45 in 0 : vector<8x512xf32>, vector<8x512xf32>, vector<8x512xf32> -> vector<24x512xf32>
    %47 = arith.truncf %46 : vector<24x512xf32> to vector<24x512xbf16>
    %c0_19 = arith.constant 0 : index
    %c0_20 = arith.constant 0 : index
    %48 = vector.load %arg6[%c0_19, %c0_20] : memref<8x24xbf16, #tpu.memory_space<vmem>>, vector<8x24xbf16>
    %cst_21 = arith.constant dense<0.000000e+00> : vector<8x512xf32>
    %49 = tpu.matmul %48, %47, %cst_21 {dimension_numbers = #tpu.dot_dimension_numbers<[1], [0], [0], [1], [0, 0, 1, 1], [], []>} : vector<8x24xbf16>, vector<24x512xbf16>, vector<8x512xf32> -> vector<8x512xf32>
    %cst_22 = arith.constant dense<0.000000e+00> : vector<8xf32>
    %50 = vector.multi_reduction <add>, %49, %cst_22 [1] : vector<8x512xf32> to vector<8xf32>
    %51 = vector.shape_cast %50 : vector<8xf32> to vector<8x1xf32>
    %52 = arith.mulf %49, %49 : vector<8x512xf32>
    %cst_23 = arith.constant dense<0.000000e+00> : vector<8xf32>
    %53 = vector.multi_reduction <add>, %52, %cst_23 [1] : vector<8x512xf32> to vector<8xf32>
    %54 = vector.shape_cast %53 : vector<8xf32> to vector<8x1xf32>
    %cst_24 = arith.constant 0.001953125 : f32
    %55 = vector.broadcast %cst_24 : f32 to vector<8x1xf32>
    %56 = arith.mulf %51, %55 : vector<8x1xf32>
    %cst_25 = arith.constant 0.001953125 : f32
    %57 = vector.broadcast %cst_25 : f32 to vector<8x1xf32>
    %58 = arith.mulf %54, %57 : vector<8x1xf32>
    %59 = arith.mulf %56, %56 : vector<8x1xf32>
    %60 = arith.subf %58, %59 : vector<8x1xf32>
    %c0_26 = arith.constant 0 : index
    %c0_27 = arith.constant 0 : index
    %61 = vector.load %arg7[%c0_26, %c0_27] : memref<8x1xf32, #tpu.memory_space<vmem>>, vector<8x1xf32>
    %cst_28 = arith.constant 9.99999974E-6 : f32
    %62 = vector.broadcast %cst_28 : f32 to vector<8x1xf32>
    %63 = arith.addf %60, %62 : vector<8x1xf32>
    %64 = math.rsqrt %63 : vector<8x1xf32>
    %65 = arith.mulf %61, %64 : vector<8x1xf32>
    %c0_29 = arith.constant 0 : index
    %c0_30 = arith.constant 0 : index
    %66 = vector.load %arg8[%c0_29, %c0_30] : memref<8x1xf32, #tpu.memory_space<vmem>>, vector<8x1xf32>
    %67 = arith.mulf %56, %65 : vector<8x1xf32>
    %68 = arith.subf %66, %67 : vector<8x1xf32>
    %69 = vector.broadcast %65 : vector<8x1xf32> to vector<8x512xf32>
    %70 = arith.mulf %49, %69 : vector<8x512xf32>
    %71 = vector.broadcast %68 : vector<8x1xf32> to vector<8x512xf32>
    %72 = arith.addf %70, %71 : vector<8x512xf32>
    %cst_31 = arith.constant 0.000000e+00 : f32
    %73 = vector.broadcast %cst_31 : f32 to vector<8x512xf32>
    %74 = arith.maximumf %72, %73 : vector<8x512xf32>
    %c0_32 = arith.constant 0 : index
    %c0_33 = arith.constant 0 : index
    %75 = vector.load %arg13[%c0_32, %c0_33] : memref<8x512xf32, #tpu.memory_space<vmem>>, vector<8x512xf32>
    tpu.vector_store %arg13[%c0_32, %c0_33], %74 {strides = array<i32>} : memref<8x512xf32, #tpu.memory_space<vmem>>, vector<8x512xf32>,
    %c1_i32_34 = arith.constant 1 : i32
    %76 = tpu.dynamic_rotate %74 by %c1_i32_34 dim 1 : vector<8x512xf32>, i32 -> vector<8x512xf32>
    %77 = vector.broadcast %1 : vector<1x512xf32> to vector<8x512xf32>
    %78 = arith.mulf %76, %77 : vector<8x512xf32>
    %c511_i32_35 = arith.constant 511 : i32
    %79 = tpu.dynamic_rotate %74 by %c511_i32_35 dim 1 : vector<8x512xf32>, i32 -> vector<8x512xf32>
    %80 = vector.broadcast %2 : vector<1x512xf32> to vector<8x512xf32>
    %81 = arith.mulf %79, %80 : vector<8x512xf32>
    %82 = tpu.concatenate %78, %74, %81 in 0 : vector<8x512xf32>, vector<8x512xf32>, vector<8x512xf32> -> vector<24x512xf32>
    %83 = arith.truncf %82 : vector<24x512xf32> to vector<24x512xbf16>
    %c0_36 = arith.constant 0 : index
    %c0_37 = arith.constant 0 : index
    %84 = vector.load %arg9[%c0_36, %c0_37] : memref<8x24xbf16, #tpu.memory_space<vmem>>, vector<8x24xbf16>
    %cst_38 = arith.constant dense<0.000000e+00> : vector<8x512xf32>
    %85 = tpu.matmul %84, %83, %cst_38 {dimension_numbers = #tpu.dot_dimension_numbers<[1], [0], [0], [1], [0, 0, 1, 1], [], []>} : vector<8x24xbf16>, vector<24x512xbf16>, vector<8x512xf32> -> vector<8x512xf32>
    %cst_39 = arith.constant dense<0.000000e+00> : vector<8xf32>
    %86 = vector.multi_reduction <add>, %85, %cst_39 [1] : vector<8x512xf32> to vector<8xf32>
    %87 = vector.shape_cast %86 : vector<8xf32> to vector<8x1xf32>
    %88 = arith.mulf %85, %85 : vector<8x512xf32>
    %cst_40 = arith.constant dense<0.000000e+00> : vector<8xf32>
    %89 = vector.multi_reduction <add>, %88, %cst_40 [1] : vector<8x512xf32> to vector<8xf32>
    %90 = vector.shape_cast %89 : vector<8xf32> to vector<8x1xf32>
    %cst_41 = arith.constant 0.001953125 : f32
    %91 = vector.broadcast %cst_41 : f32 to vector<8x1xf32>
    %92 = arith.mulf %87, %91 : vector<8x1xf32>
    %cst_42 = arith.constant 0.001953125 : f32
    %93 = vector.broadcast %cst_42 : f32 to vector<8x1xf32>
    %94 = arith.mulf %90, %93 : vector<8x1xf32>
    %95 = arith.mulf %92, %92 : vector<8x1xf32>
    %96 = arith.subf %94, %95 : vector<8x1xf32>
    %c0_43 = arith.constant 0 : index
    %c0_44 = arith.constant 0 : index
    %97 = vector.load %arg10[%c0_43, %c0_44] : memref<8x1xf32, #tpu.memory_space<vmem>>, vector<8x1xf32>
    %cst_45 = arith.constant 9.99999974E-6 : f32
    %98 = vector.broadcast %cst_45 : f32 to vector<8x1xf32>
    %99 = arith.addf %96, %98 : vector<8x1xf32>
    %100 = math.rsqrt %99 : vector<8x1xf32>
    %101 = arith.mulf %97, %100 : vector<8x1xf32>
    %c0_46 = arith.constant 0 : index
    %c0_47 = arith.constant 0 : index
    %102 = vector.load %arg11[%c0_46, %c0_47] : memref<8x1xf32, #tpu.memory_space<vmem>>, vector<8x1xf32>
    %103 = arith.mulf %92, %101 : vector<8x1xf32>
    %104 = arith.subf %102, %103 : vector<8x1xf32>
    %105 = vector.broadcast %101 : vector<8x1xf32> to vector<8x512xf32>
    %106 = arith.mulf %85, %105 : vector<8x512xf32>
    %107 = vector.broadcast %104 : vector<8x1xf32> to vector<8x512xf32>
    %108 = arith.addf %106, %107 : vector<8x512xf32>
    %cst_48 = arith.constant 0.000000e+00 : f32
    %109 = vector.broadcast %cst_48 : f32 to vector<8x512xf32>
    %110 = arith.maximumf %108, %109 : vector<8x512xf32>
    %c0_49 = arith.constant 0 : index
    %c0_50 = arith.constant 0 : index
    %111 = vector.load %arg14[%c0_49, %c0_50] : memref<8x512xf32, #tpu.memory_space<vmem>>, vector<8x512xf32>
    tpu.vector_store %arg14[%c0_49, %c0_50], %110 {strides = array<i32>} : memref<8x512xf32, #tpu.memory_space<vmem>>, vector<8x512xf32>,
    %112 = arith.truncf %110 : vector<8x512xf32> to vector<8x512xbf16>
    %c0_51 = arith.constant 0 : index
    %c0_52 = arith.constant 0 : index
    %113 = vector.load %arg2[%c0_51, %c0_52] : memref<512x128xbf16, #tpu.memory_space<vmem>>, vector<512x128xbf16>
    %cst_53 = arith.constant dense<0.000000e+00> : vector<8x128xf32>
    %114 = tpu.matmul %112, %113, %cst_53 {dimension_numbers = #tpu.dot_dimension_numbers<[1], [0], [0], [1], [0, 0, 1, 1], [], []>} : vector<8x512xbf16>, vector<512x128xbf16>, vector<8x128xf32> -> vector<8x128xf32>
    %c0_54 = arith.constant 0 : index
    %c0_55 = arith.constant 0 : index
    %115 = vector.load %arg15[%c0_54, %c0_55] : memref<8x128xf32, #tpu.memory_space<vmem>>, vector<8x128xf32>
    tpu.vector_store %arg15[%c0_54, %c0_55], %114 {strides = array<i32>} : memref<8x128xf32, #tpu.memory_space<vmem>>, vector<8x128xf32>,
    return
  }
}

</mosaic_0001>

<bundles_post_ra>
// kernel: encoder2d_forward.1
= control target key start
LH: loop header
LB: loop body
LE: loop exit
PB: predicated region body
PF: predicated region fallthrough
CT: control target
= control target key end

     0   :  { %s1201_s22 = smov 127   ;;  %s1202_s23 = smov 1   ;;  %v1203_v4 = vmov 0   ;;  %v64_v5 = vlaneseq  ;;  %vm170_vm2 = vcmask 1043456   ;;  %vm184_vm3 = vcmask 1045504   ;;  %s1644_s0 = inlined_call_operand.vmem [shape: f32[4,512], index: 0, kind: input, shape index: {}]   ;;  %s1645_s1 = inlined_call_operand.vmem [shape: f32[3,512], index: 1, kind: input, shape index: {}]   ;;  %s1646_s3 = inlined_call_operand.vmem [shape: bf16[8,12], index: 3, kind: input, shape index: {}]   ;;  %s1647_s4 = inlined_call_operand.vmem [shape: f32[8,1], index: 4, kind: input, shape index: {}]   ;;  %s1648_s5 = inlined_call_operand.vmem [shape: f32[8,1], index: 5, kind: input, shape index: {}]   ;;  %s1649_s12 = inlined_call_operand.vmem [shape: f32[8,512], index: 12, kind: output, shape index: {0}]   ;;  %s1650_s6 = inlined_call_operand.vmem [shape: bf16[8,24], index: 6, kind: input, shape index: {}]   ;;  %s1651_s7 = inlined_call_operand.vmem [shape: f32[8,1], index: 7, kind: input, shape index: {}]   ;;  %s1652_s8 = inlined_call_operand.vmem [shape: f32[8,1], index: 8, kind: input, shape index: {}]   ;;  %s1653_s13 = inlined_call_operand.vmem [shape: f32[8,512], index: 13, kind: output, shape index: {1}]   ;;  %s1654_s9 = inlined_call_operand.vmem [shape: bf16[8,24], index: 9, kind: input, shape index: {}]   ;;  %s1655_s2 = inlined_call_operand.vmem [shape: bf16[512,128], index: 2, kind: input, shape index: {}]   ;;  %s1656_s10 = inlined_call_operand.vmem [shape: f32[8,1], index: 10, kind: input, shape index: {}]   ;;  %s1657_s11 = inlined_call_operand.vmem [shape: f32[8,1], index: 11, kind: input, shape index: {}]   ;;  %s1658_s14 = inlined_call_operand.vmem [shape: f32[8,512], index: 14, kind: output, shape index: {2}]   ;;  %s1659_s15 = inlined_call_operand.vmem [shape: f32[8,128], index: 15, kind: output, shape index: {3}]  }
   0x1   :  { %v1287_v0 = vld [vmem:[%s1644_s0] sm:$0xff]  ;;  %v1292_v1 = vld [vmem:[%s1644_s0 + $0x8] sm:$0xff]  ;;  %229 = vmatprep.mubr.bf16.mxu0 %v1203_v4  ;;  %270 = vmatprep.mubr.bf16.mxu1 %v1203_v4  ;;  %vm180_vm4 = vcmask 97280   ;;  %vm371_vm5 = vcmask 195584  }
   0x2   :  { %113 = vrot.lane.b32.xlu1 %v1287_v0, %s1201_s22  ;;  %56 = vrot.lane.b32.xlu0 %v1287_v0, %s1202_s23  ;;  %v53_v2 = vcombine.high %v1292_v1, %v1292_v1  ;;  %v52_v3 = vcombine.high %v1287_v0, %v1287_v0  ;;  %v74_v6 = vshrl.u32 %v64_v5, 7  ;;  %v46_v9 = vld [vmem:[%s1645_s1] sm:$0x77]  ;;  %v1317_v10 = vand.u32 127, %v64_v5  ;;  %v47_v19 = vld [vmem:[%s1645_s1 + $0x8] sm:$0x77] }
   0x3   :  { %1157 = vset.pattern.permute.xlu0 %v1203_v4  ;;  %1158 = vset.pattern.permute.xlu1 %v1203_v4  ;;  %v166_v34 = vcombine.low %v1287_v0, %v1287_v0  ;;  %v167_v51 = vcombine.low %v1292_v1, %v1292_v1  ;;  %v179_v61 = vld [vmem:[%s1646_s3] sm:$0xf] }
   0x4   :  { %v75_v7 = vsub.s32 0, %v74_v6  ;;  %v79_v8 = vsub.s32 4, %v74_v6  ;;  %v128_v11 = vsub.s32 2, %v74_v6  ;;  %v132_v12 = vsub.s32 6, %v74_v6 }
   0x5   :  { %vm66_vm0 = vcmp.lt.s32.totalorder %v1317_v10, 1  ;;  %vm121_vm1 = vcmp.lt.s32.totalorder %v1317_v10, 127  ;;  %v560_v10 = vld [vmem:[%s1654_s9] sm:$0xf] }
   0x6   :  { %62 = vrot.lane.b32.xlu1 %v53_v2, %s1202_s23  ;;  %58 = vrot.lane.b32.xlu0 %v52_v3, %s1202_s23  ;;  %v76_v13 = vrot.slane %v46_v9, %v75_v7  ;;  %v80_v14 = vrot.slane %v46_v9, %v79_v8  ;;  %v129_v17 = vrot.slane %v46_v9, %v128_v11 }
   0x7   :  { %v133_v18 = vrot.slane %v46_v9, %v132_v12  ;;  %v137_v26 = vrot.slane %v47_v19, %v128_v11  ;;  %v84_v27 = vrot.slane %v47_v19, %v75_v7  ;;  %v141_v30 = vrot.slane %v47_v19, %v132_v12 }
   0x8   :  { %v1323_v20 = vrot.slane %v76_v13, %v75_v7  ;;  %v1325_v21 = vrot.slane %v80_v14, %v75_v7  ;;  %v1332_v28 = vrot.slane %v129_v17, %v128_v11  ;;  %v88_v31 = vrot.slane %v47_v19, %v79_v8 }
   0x9   :  { %v1334_v29 = vrot.slane %v133_v18, %v128_v11  ;;  %v1344_v39 = vrot.slane %v137_v26, %v128_v11  ;;  %v1346_v40 = vrot.slane %v84_v27, %v75_v7  ;;  %v1350_v43 = vrot.slane %v141_v30, %v128_v11 }
   0xa   :  { %117 = vrot.lane.b32.xlu1 %v1292_v1, %s1201_s22  ;;  %115 = vrot.lane.b32.xlu0 %v52_v3, %s1201_s22  ;;  %v1352_v44 = vrot.slane %v88_v31, %v75_v7 }
   0xe   :  { %119 = vrot.lane.b32.xlu1 %v53_v2, %s1201_s22  ;;  %60 = vrot.lane.b32.xlu0 %v1292_v1, %s1202_s23 }
  0x74   :  { %v114_v15 = vpop.permute.xlu1 %113  ;;  %v57_v16 = vpop.permute.xlu0 %56 }
  0x78   :  { %v63_v22 = vpop.permute.xlu1 %62  ;;  %v59_v23 = vpop.permute.xlu0 %58 }
  0x79   :  { %v70_v24 = vsel %vm66_vm0, %v63_v22, %v57_v16  ;;  %v69_v25 = vsel %vm66_vm0, %v57_v16, %v59_v23 }
  0x7a   :  { %v109_v32 = vmul.f32 %v1323_v20, %v70_v24  ;;  %v110_v33 = vmul.f32 %v1325_v21, %v69_v25 }
  0x7c   :  { %v118_v35 = vpop.permute.xlu1 %117  ;;  %v116_v36 = vpop.permute.xlu0 %115  ;;  %v172_v45 = vsel %vm170_vm2, %v110_v33, %v1287_v0  ;;  %v171_v46 = vsel %vm170_vm2, %v109_v32, %v166_v34  ;;  %v297_v34 = vld [vmem:[%s1647_s4] sm:$0xff] }
  0x7d   :  { %v123_v37 = vsel %vm121_vm1, %v116_v36, %v118_v35  ;;  %v124_v38 = vsel %vm121_vm1, %v114_v15, %v116_v36 }
  0x7e   :  { %v162_v41 = vmul.f32 %v1332_v28, %v124_v38  ;;  %v163_v42 = vmul.f32 %v1334_v29, %v123_v37  ;;  %v301_v37 = vld [vmem:[%s1648_s5] sm:$0xff] }
  0x80   :  { %v120_v47 = vpop.permute.xlu1 %119  ;;  %v61_v48 = vpop.permute.xlu0 %60  ;;  %v176_v49 = vpack.c.bf16 %v163_v42, %v172_v45  ;;  %v175_v50 = vpack.c.bf16 %v162_v41, %v171_v46 }
  0x81   :  { %v122_v52 = vsel %vm121_vm1, %v118_v35, %v120_v47  ;;  %v125_v53 = vsel %vm121_vm1, %v120_v47, %v114_v15  ;;  %v67_v54 = vsel %vm66_vm0, %v61_v48, %v63_v22  ;;  %v68_v55 = vsel %vm66_vm0, %v59_v23, %v61_v48 }
  0x82   :  { %v164_v56 = vmul.f32 %v1344_v39, %v122_v52  ;;  %v165_v57 = vmul.f32 %v1350_v43, %v125_v53  ;;  %v111_v58 = vmul.f32 %v1346_v40, %v68_v55  ;;  %v112_v59 = vmul.f32 %v1352_v44, %v67_v54  ;;  %1066 = vmatprep.subr.msk.bf16.mxu0 %vm184_vm3, %v176_v49 }
  0x83   :  { %v186_v60 = vsel %vm184_vm3, %v175_v50, 0 }
  0x84   :  { %198 = vmatpush1.bf16.msra.mxu0 %v186_v60  ;;  %v174_v62 = vsel %vm170_vm2, %v112_v59, %v1292_v1  ;;  %v173_v63 = vsel %vm170_vm2, %v111_v58, %v167_v51 }
  0x85   :  { %v178_v0 = vpack.c.bf16 %v165_v57, %v174_v62  ;;  %v177_v2 = vpack.c.bf16 %v164_v56, %v173_v63 }
  0x87   :  { %1067 = vmatmul.mubr.msk.bf16.vlgmr.msra.gmra.mrb[0].mxu0 %vm180_vm4, %v179_v61  ;;  %1068 = vmatprep.subr.msk.bf16.mxu1 %vm184_vm3, %v178_v0  ;;  %v192_v3 = vsel %vm184_vm3, %v177_v2, 0 }
  0x88   :  { %239 = vmatpush1.bf16.msra.mxu1 %v192_v3  ;;  %419 = vmatprep.mubr.bf16.mxu0 %v1203_v4 }
  0x8b   :  { %1069 = vmatmul.mubr.msk.bf16.vlgmr.msra.gmra.mrb[0].mxu1 %vm180_vm4, %v179_v61 }
  0x8c   :  { %460 = vmatprep.mubr.bf16.mxu1 %v1203_v4 }
 0x15a   :  { %v231_v5 = vpop.f32.mrb[0].mxu0 }
 0x15b   :  { %v284_v6 = vmul.f32 %v231_v5, %v231_v5  ;;  %v233_v7 = vpop.f32.mrb[1].mxu0 }
 0x15c   :  { %v279_v8 = vadd.f32 %v233_v7, %v231_v5  ;;  %v285_v1 = vmul.f32 %v233_v7, %v233_v7  ;;  %v235_v9 = vpop.f32.mrb[2].mxu0 }
 0x15d   :  { %v236_v11 = vpop.f32.mrb[3].mxu0 }
 0x15e   :  { %v272_v12 = vpop.f32.mrb[0].mxu1  ;;  %v288_v13 = vadd.f32 %v285_v1, %v284_v6 }
 0x15f   :  { %v286_v14 = vmul.f32 %v272_v12, %v272_v12  ;;  %v274_v15 = vpop.f32.mrb[1].mxu1  ;;  %v280_v16 = vadd.f32 %v279_v8, %v272_v12 }
 0x160   :  { %v276_v17 = vpop.f32.mrb[2].mxu1  ;;  %v287_v18 = vmul.f32 %v274_v15, %v274_v15 }
 0x161   :  { %v277_v19 = vpop.f32.mrb[3].mxu1  ;;  %v281_v22 = vadd.f32 %v280_v16, %v274_v15  ;;  %v289_v23 = vadd.f32 %v288_v13, %v286_v14 }
 0x163   :  { %282 = vadd.xlane.f32.xlu0 %v281_v22  ;;  %v290_v24 = vadd.f32 %v289_v23, %v287_v18 }
 0x165   :  { %291 = vadd.xlane.f32.xlu1 %v290_v24 }
 0x1f0   :  { %v283_v25 = vpop.xlane.xlu0 %282 }
 0x1f1   :  { %v293_v26 = vmul.f32 0.001953125, %v283_v25 }
 0x1f2   :  { %v292_v27 = vpop.xlane.xlu1 %291 }
 0x1f3   :  { %v295_v30 = vmul.f32 %v293_v26, %v293_v26  ;;  %v294_v31 = vmul.f32 0.001953125, %v292_v27 }
 0x1f5   :  { %v296_v32 = vsub.f32 %v294_v31, %v295_v30  ;;  %v370_v31 = vld [vmem:[%s1650_s6] sm:$0xf] }
 0x1f7   :  { %v298_v33 = vadd.f32 1e-05, %v296_v32 }
 0x1f9   :  { %1195 = vrsqrt.f32 %v298_v33 }
 0x203   :  { %v1196_v35 = vpop.eup %1195 }
 0x204   :  { %v300_v36 = vmul.f32 %v1196_v35, %v297_v34 }
 0x206   :  { %306 = vperm.xlu0 %1157, %v300_v36   ;;  %v302_v38 = vmul.f32 %v300_v36, %v293_v26 }
 0x208   :  { %v303_v41 = vsub.f32 %v301_v37, %v302_v38 }
 0x20a   :  { %315 = vperm.xlu1 %1158, %v303_v41  }
 0x285   :  { %v307_v42 = vpop.permute.xlu0 %306 }
 0x286   :  { %v309_v45 = vmul.f32 %v307_v42, %v231_v5  ;;  %v310_v46 = vmul.f32 %v307_v42, %v233_v7  ;;  %v311_v47 = vmul.f32 %v307_v42, %v272_v12  ;;  %v312_v48 = vmul.f32 %v307_v42, %v274_v15 }
 0x289   :  { %v316_v49 = vpop.permute.xlu1 %315 }
 0x28a   :  { %v318_v50 = vadd.f32 %v316_v49, %v309_v45  ;;  %v319_v51 = vadd.f32 %v316_v49, %v310_v46  ;;  %v320_v52 = vadd.f32 %v316_v49, %v311_v47  ;;  %v321_v53 = vadd.f32 %v316_v49, %v312_v48 }
 0x28c   :  { %v322_v54 = vmax.f32 %v318_v50, 0.0  ;;  %v323_v55 = vmax.f32 %v319_v51, 0.0  ;;  %v324_v56 = vmax.f32 %v320_v52, 0.0  ;;  %v325_v57 = vmax.f32 %v321_v53, 0.0 }
 0x28e   :  { %326 = vst [vmem:[%s1649_s12] sm:$0xff] %v322_v54  ;;  %327 = vst [vmem:[%s1649_s12 + $0x8] sm:$0xff] %v323_v55  ;;  %350 = vrot.lane.b32.xlu0 %v324_v56, %s1201_s22  ;;  %330 = vrot.lane.b32.xlu1 %v322_v54, %s1202_s23 }
 0x28f   :  { %328 = vst [vmem:[%s1649_s12 + $0x10] sm:$0xff] %v324_v56  ;;  %329 = vst [vmem:[%s1649_s12 + $0x18] sm:$0xff] %v325_v57 }
 0x292   :  { %332 = vrot.lane.b32.xlu1 %v323_v55, %s1202_s23 }
 0x296   :  { %336 = vrot.lane.b32.xlu1 %v325_v57, %s1202_s23 }
 0x29a   :  { %334 = vrot.lane.b32.xlu1 %v324_v56, %s1202_s23 }
 0x29e   :  { %346 = vrot.lane.b32.xlu1 %v322_v54, %s1201_s22 }
 0x2a2   :  { %348 = vrot.lane.b32.xlu1 %v323_v55, %s1201_s22 }
 0x2a6   :  { %352 = vrot.lane.b32.xlu1 %v325_v57, %s1201_s22 }
 0x300   :  { %v331_v58 = vpop.permute.xlu1 %330  ;;  %v351_v13 = vpop.permute.xlu0 %350 }
 0x304   :  { %v333_v59 = vpop.permute.xlu1 %332 }
 0x305   :  { %v340_v60 = vsel %vm66_vm0, %v331_v58, %v333_v59 }
 0x306   :  { %v343_v61 = vmul.f32 %v340_v60, %v1325_v21 }
 0x308   :  { %v337_v62 = vpop.permute.xlu1 %336  ;;  %v363_v63 = vpack.c.bf16 %v323_v55, %v343_v61 }
 0x309   :  { %v341_v0 = vsel %vm66_vm0, %v337_v62, %v331_v58 }
 0x30a   :  { %v342_v2 = vmul.f32 %v341_v0, %v1323_v20  ;;  %387 = vmatprep.subr.bf16.mxu0 %v363_v63  ;;  %v487_v63 = vld [vmem:[%s1651_s7] sm:$0xff] }
 0x30c   :  { %v362_v3 = vpack.c.bf16 %v322_v54, %v342_v2  ;;  %v335_v5 = vpop.permute.xlu1 %334 }
 0x30d   :  { %v338_v6 = vsel %vm66_vm0, %v335_v5, %v337_v62  ;;  %v339_v7 = vsel %vm66_vm0, %v333_v59, %v335_v5 }
 0x30e   :  { %v344_v8 = vmul.f32 %v339_v7, %v1346_v40  ;;  %v345_v1 = vmul.f32 %v338_v6, %v1352_v44  ;;  %388 = vmatpush1.bf16.msra.mxu0 %v362_v3  ;;  %v491_v3 = vld [vmem:[%s1652_s8] sm:$0xff] }
 0x310   :  { %v364_v9 = vpack.c.bf16 %v324_v56, %v344_v8  ;;  %v347_v11 = vpop.permute.xlu1 %346  ;;  %v365_v12 = vpack.c.bf16 %v325_v57, %v345_v1 }
 0x312   :  { %428 = vmatprep.subr.bf16.mxu1 %v365_v12 }
 0x313   :  { %429 = vmatpush1.bf16.msra.mxu1 %v364_v9 }
 0x314   :  { %v349_v14 = vpop.permute.xlu1 %348 }
 0x315   :  { %v355_v15 = vsel %vm121_vm1, %v349_v14, %v351_v13  ;;  %v356_v16 = vsel %vm121_vm1, %v347_v11, %v349_v14 }
 0x316   :  { %v358_v17 = vmul.f32 %v356_v16, %v1332_v28  ;;  %v359_v18 = vmul.f32 %v355_v15, %v1334_v29 }
 0x318   :  { %v366_v19 = vpack.c.bf16 %v358_v17, %v358_v17  ;;  %v367_v22 = vpack.c.bf16 %v359_v18, %v359_v18  ;;  %v353_v23 = vpop.permute.xlu1 %352 }
 0x319   :  { %v354_v24 = vsel %vm121_vm1, %v351_v13, %v353_v23  ;;  %v357_v25 = vsel %vm121_vm1, %v353_v23, %v347_v11 }
 0x31a   :  { %v360_v26 = vmul.f32 %v354_v24, %v1344_v39  ;;  %v361_v27 = vmul.f32 %v357_v25, %v1350_v43  ;;  %1070 = vmatprep.subr.msk.bf16.mxu0 %vm170_vm2, %v367_v22  ;;  %v376_v30 = vsel %vm170_vm2, %v366_v19, 0 }
 0x31b   :  { %390 = vmatpush1.bf16.msra.mxu0 %v376_v30 }
 0x31c   :  { %v368_v32 = vpack.c.bf16 %v360_v26, %v360_v26  ;;  %v369_v33 = vpack.c.bf16 %v361_v27, %v361_v27 }
 0x31e   :  { %1071 = vmatmul.mubr.msk.bf16.vlgmr.msra.gmra.mrb[4].mxu0 %vm371_vm5, %v370_v31  ;;  %1072 = vmatprep.subr.msk.bf16.mxu1 %vm170_vm2, %v369_v33  ;;  %v382_v34 = vsel %vm170_vm2, %v368_v32, 0 }
 0x31f   :  { %431 = vmatpush1.bf16.msra.mxu1 %v382_v34  ;;  %608 = vmatprep.mubr.bf16.mxu0 %v1203_v4 }
 0x322   :  { %1073 = vmatmul.mubr.msk.bf16.vlgmr.msra.gmra.mrb[4].mxu1 %vm371_vm5, %v370_v31 }
 0x323   :  { %649 = vmatprep.mubr.bf16.mxu1 %v1203_v4 }
 0x3f1   :  { %v421_v35 = vpop.f32.mrb[4].mxu0 }
 0x3f2   :  { %v474_v36 = vmul.f32 %v421_v35, %v421_v35  ;;  %v423_v37 = vpop.f32.mrb[5].mxu0 }
 0x3f3   :  { %v469_v38 = vadd.f32 %v423_v37, %v421_v35  ;;  %v475_v41 = vmul.f32 %v423_v37, %v423_v37  ;;  %v425_v42 = vpop.f32.mrb[6].mxu0 }
 0x3f4   :  { %v426_v45 = vpop.f32.mrb[7].mxu0 }
 0x3f5   :  { %v462_v46 = vpop.f32.mrb[4].mxu1  ;;  %v478_v47 = vadd.f32 %v475_v41, %v474_v36 }
 0x3f6   :  { %v476_v48 = vmul.f32 %v462_v46, %v462_v46  ;;  %v464_v49 = vpop.f32.mrb[5].mxu1  ;;  %v470_v50 = vadd.f32 %v469_v38, %v462_v46 }
 0x3f7   :  { %v466_v51 = vpop.f32.mrb[6].mxu1  ;;  %v477_v52 = vmul.f32 %v464_v49, %v464_v49 }
 0x3f8   :  { %v467_v53 = vpop.f32.mrb[7].mxu1  ;;  %v471_v54 = vadd.f32 %v470_v50, %v464_v49  ;;  %v479_v55 = vadd.f32 %v478_v47, %v476_v48 }
 0x3fa   :  { %472 = vadd.xlane.f32.xlu0 %v471_v54  ;;  %v480_v56 = vadd.f32 %v479_v55, %v477_v52 }
 0x3fc   :  { %481 = vadd.xlane.f32.xlu1 %v480_v56 }
 0x487   :  { %v473_v4 = vpop.xlane.xlu0 %472 }
 0x488   :  { %v483_v57 = vmul.f32 0.001953125, %v473_v4 }
 0x489   :  { %v482_v58 = vpop.xlane.xlu1 %481 }
 0x48a   :  { %v485_v59 = vmul.f32 %v483_v57, %v483_v57  ;;  %v484_v60 = vmul.f32 0.001953125, %v482_v58 }
 0x48c   :  { %v486_v61 = vsub.f32 %v484_v60, %v485_v59 }
 0x48e   :  { %v488_v62 = vadd.f32 1e-05, %v486_v61 }
 0x490   :  { %1197 = vrsqrt.f32 %v488_v62 }
 0x49a   :  { %v1198_v0 = vpop.eup %1197 }
 0x49b   :  { %v490_v2 = vmul.f32 %v1198_v0, %v487_v63 }
 0x49d   :  { %496 = vperm.xlu0 %1157, %v490_v2   ;;  %v492_v5 = vmul.f32 %v490_v2, %v483_v57 }
 0x49f   :  { %v493_v6 = vsub.f32 %v491_v3, %v492_v5 }
 0x4a1   :  { %505 = vperm.xlu1 %1158, %v493_v6  }
 0x51c   :  { %v497_v7 = vpop.permute.xlu0 %496 }
 0x51d   :  { %v499_v8 = vmul.f32 %v497_v7, %v421_v35  ;;  %v500_v1 = vmul.f32 %v497_v7, %v423_v37  ;;  %v501_v9 = vmul.f32 %v497_v7, %v462_v46  ;;  %v502_v11 = vmul.f32 %v497_v7, %v464_v49 }
 0x520   :  { %v506_v12 = vpop.permute.xlu1 %505 }
 0x521   :  { %v508_v13 = vadd.f32 %v506_v12, %v499_v8  ;;  %v509_v14 = vadd.f32 %v506_v12, %v500_v1  ;;  %v510_v15 = vadd.f32 %v506_v12, %v501_v9  ;;  %v511_v16 = vadd.f32 %v506_v12, %v502_v11  ;;  %v1163_v9 = vld [vmem:[%s1655_s2 + $0x40] sm:$0xff]  }
 0x522   :  { %v1164_v11 = vld [vmem:[%s1655_s2 + $0xc0] sm:$0xff]  }
 0x523   :  { %v512_v17 = vmax.f32 %v508_v13, 0.0  ;;  %v513_v18 = vmax.f32 %v509_v14, 0.0  ;;  %v514_v19 = vmax.f32 %v510_v15, 0.0  ;;  %v515_v22 = vmax.f32 %v511_v16, 0.0  ;;  %v1165_v12 = vld [vmem:[%s1655_s2] sm:$0xff]   ;;  %v1167_v14 = vld [vmem:[%s1655_s2 + $0x48] sm:$0xff]  }
 0x524   :  { %v1166_v13 = vld [vmem:[%s1655_s2 + $0x80] sm:$0xff]   ;;  %v1168_v15 = vld [vmem:[%s1655_s2 + $0xc8] sm:$0xff]  }
 0x525   :  { %516 = vst [vmem:[%s1653_s13] sm:$0xff] %v512_v17  ;;  %517 = vst [vmem:[%s1653_s13 + $0x8] sm:$0xff] %v513_v18  ;;  %522 = vrot.lane.b32.xlu1 %v513_v18, %s1202_s23  ;;  %520 = vrot.lane.b32.xlu0 %v512_v17, %s1202_s23 }
 0x526   :  { %518 = vst [vmem:[%s1653_s13 + $0x10] sm:$0xff] %v514_v19  ;;  %519 = vst [vmem:[%s1653_s13 + $0x18] sm:$0xff] %v515_v22  ;;  %v1169_v16 = vld [vmem:[%s1655_s2 + $0x8] sm:$0xff]  }
 0x529   :  { %524 = vrot.lane.b32.xlu1 %v514_v19, %s1202_s23  ;;  %526 = vrot.lane.b32.xlu0 %v515_v22, %s1202_s23 }
 0x52d   :  { %538 = vrot.lane.b32.xlu1 %v513_v18, %s1201_s22  ;;  %536 = vrot.lane.b32.xlu0 %v512_v17, %s1201_s22 }
 0x531   :  { %542 = vrot.lane.b32.xlu1 %v515_v22, %s1201_s22  ;;  %540 = vrot.lane.b32.xlu0 %v514_v19, %s1201_s22 }
 0x597   :  { %v523_v23 = vpop.permute.xlu1 %522  ;;  %v521_v24 = vpop.permute.xlu0 %520 }
 0x598   :  { %v530_v25 = vsel %vm66_vm0, %v521_v24, %v523_v23 }
 0x599   :  { %v533_v26 = vmul.f32 %v530_v25, %v1325_v21  ;;  %v1176_v25 = vld [vmem:[%s1655_s2 + $0xd8] sm:$0xff]  }
 0x59b   :  { %v525_v27 = vpop.permute.xlu1 %524  ;;  %v527_v30 = vpop.permute.xlu0 %526  ;;  %v553_v31 = vpack.c.bf16 %v513_v18, %v533_v26  ;;  %v1171_v18 = vld [vmem:[%s1655_s2 + $0x50] sm:$0xff]   ;;  %v1177_v26 = vld [vmem:[%s1655_s2 + $0x18] sm:$0xff]  }
 0x59c   :  { %v529_v32 = vsel %vm66_vm0, %v523_v23, %v525_v27  ;;  %v528_v33 = vsel %vm66_vm0, %v525_v27, %v527_v30  ;;  %v531_v34 = vsel %vm66_vm0, %v527_v30, %v521_v24  ;;  %v1174_v23 = vld [vmem:[%s1655_s2 + $0x90] sm:$0xff]   ;;  %v1175_v24 = vld [vmem:[%s1655_s2 + $0x58] sm:$0xff]   ;;  %v1179_v30 = vld [vmem:[%s1655_s2 + $0x60] sm:$0xff]  }
 0x59d   :  { %v534_v35 = vmul.f32 %v529_v32, %v1346_v40  ;;  %v532_v36 = vmul.f32 %v531_v34, %v1323_v20  ;;  %v535_v37 = vmul.f32 %v528_v33, %v1352_v44  ;;  %576 = vmatprep.subr.bf16.mxu0 %v553_v31  ;;  %v1178_v27 = vld [vmem:[%s1655_s2 + $0x98] sm:$0xff]   ;;  %v1180_v31 = vld [vmem:[%s1655_s2 + $0xe0] sm:$0xff]   ;;  %v1183_v34 = vld [vmem:[%s1655_s2 + $0x68] sm:$0xff]  }
 0x59e   :  { %v1181_v32 = vld [vmem:[%s1655_s2 + $0x20] sm:$0xff]  }
 0x59f   :  { %v554_v21 = vpack.c.bf16 %v514_v19, %v534_v35  ;;  %v552_v38 = vpack.c.bf16 %v512_v17, %v532_v36  ;;  %v539_v41 = vpop.permute.xlu1 %538  ;;  %v537_v42 = vpop.permute.xlu0 %536  ;;  %v555_v45 = vpack.c.bf16 %v515_v22, %v535_v37  ;;  %v1170_v17 = vld [vmem:[%s1655_s2 + $0x88] sm:$0xff]   ;;  %v1172_v19 = vld [vmem:[%s1655_s2 + $0xd0] sm:$0xff]   ;;  %v1182_v33 = vld [vmem:[%s1655_s2 + $0xa0] sm:$0xff]  }
 0x5a0   :  { %v546_v46 = vsel %vm121_vm1, %v537_v42, %v539_v41  ;;  %v1173_v22 = vld [vmem:[%s1655_s2 + $0x10] sm:$0xff]   ;;  %v1184_v35 = vld [vmem:[%s1655_s2 + $0xe8] sm:$0xff]  }
 0x5a1   :  { %v548_v47 = vmul.f32 %v546_v46, %v1332_v28  ;;  %577 = vmatpush1.bf16.msra.mxu0 %v552_v38  ;;  %617 = vmatprep.subr.bf16.mxu1 %v555_v45  ;;  %v676_v46 = vld [vmem:[%s1656_s10] sm:$0xff] }
 0x5a2   :  { %618 = vmatpush1.bf16.msra.mxu1 %v554_v21 }
 0x5a3   :  { %v543_v48 = vpop.permute.xlu1 %542  ;;  %v541_v40 = vpop.permute.xlu0 %540  ;;  %v556_v50 = vpack.c.bf16 %v548_v47, %v548_v47 }
 0x5a4   :  { %v547_v20 = vsel %vm121_vm1, %v543_v48, %v537_v42  ;;  %v544_v44 = vsel %vm121_vm1, %v541_v40, %v543_v48  ;;  %v545_v49 = vsel %vm121_vm1, %v539_v41, %v541_v40  ;;  %v680_v40 = vld [vmem:[%s1657_s11] sm:$0xff] }
 0x5a5   :  { %v551_v51 = vmul.f32 %v547_v20, %v1350_v43  ;;  %v549_v52 = vmul.f32 %v545_v49, %v1334_v29  ;;  %v550_v28 = vmul.f32 %v544_v44, %v1344_v39  ;;  %v565_v56 = vsel %vm170_vm2, %v556_v50, 0  ;;  %v1185_v20 = vld [vmem:[%s1655_s2 + $0x28] sm:$0xff]   ;;  %v1187_v50 = vld [vmem:[%s1655_s2 + $0x70] sm:$0xff]  }
 0x5a6   :  { %v1186_v44 = vld [vmem:[%s1655_s2 + $0xa8] sm:$0xff]  }
 0x5a7   :  { %v559_v53 = vpack.c.bf16 %v551_v51, %v551_v51  ;;  %v557_v54 = vpack.c.bf16 %v549_v52, %v549_v52  ;;  %v558_v55 = vpack.c.bf16 %v550_v28, %v550_v28  ;;  %v1188_v51 = vld [vmem:[%s1655_s2 + $0xf0] sm:$0xff]  }
 0x5a8   :  { %v1189_v28 = vld [vmem:[%s1655_s2 + $0x30] sm:$0xff]  }
 0x5a9   :  { %1074 = vmatprep.subr.msk.bf16.mxu0 %vm170_vm2, %v557_v54  ;;  %1076 = vmatprep.subr.msk.bf16.mxu1 %vm170_vm2, %v559_v53  ;;  %v571_v4 = vsel %vm170_vm2, %v558_v55, 0  ;;  %v1190_v53 = vld [vmem:[%s1655_s2 + $0xb0] sm:$0xff]   ;;  %v1191_v54 = vld [vmem:[%s1655_s2 + $0x78] sm:$0xff]  }
 0x5aa   :  { %579 = vmatpush1.bf16.msra.mxu0 %v565_v56  ;;  %620 = vmatpush1.bf16.msra.mxu1 %v571_v4  ;;  %v1192_v55 = vld [vmem:[%s1655_s2 + $0xf8] sm:$0xff]  }
 0x5ab   :  { %1110 = vmatprep.subr.bf16.mxu0 %v1163_v9  ;;  %1132 = vmatprep.subr.bf16.mxu1 %v1164_v11  ;;  %v1193_v56 = vld [vmem:[%s1655_s2 + $0x38] sm:$0xff]  }
 0x5ac   :  { %v1194_v4 = vld [vmem:[%s1655_s2 + $0xb8] sm:$0xff]  }
 0x5ad   :  { %1075 = vmatmul.mubr.msk.bf16.vlgmr.msra.gmra.mrb[8].mxu0 %vm371_vm5, %v560_v10  ;;  %1077 = vmatmul.mubr.msk.bf16.vlgmr.msra.gmra.mrb[8].mxu1 %vm371_vm5, %v560_v10 }
 0x5ae   :  { %1111 = vmatpush3.bf16.msra.mxu0 %v1165_v12  ;;  %1133 = vmatpush3.bf16.msra.mxu1 %v1166_v13 }
 0x5af   :  { %1112 = vmatprep.subr.bf16.mxu0 %v1167_v14  ;;  %1134 = vmatprep.subr.bf16.mxu1 %v1168_v15 }
 0x5b2   :  { %1113 = vmatpush3.bf16.msra.mxu0 %v1169_v16  ;;  %1135 = vmatpush3.bf16.msra.mxu1 %v1170_v17 }
 0x5b3   :  { %1114 = vmatprep.subr.bf16.mxu0 %v1171_v18  ;;  %1136 = vmatprep.subr.bf16.mxu1 %v1172_v19 }
 0x5b6   :  { %1115 = vmatpush3.bf16.msra.mxu0 %v1173_v22  ;;  %1137 = vmatpush3.bf16.msra.mxu1 %v1174_v23 }
 0x5b7   :  { %1116 = vmatprep.subr.bf16.mxu0 %v1175_v24  ;;  %1138 = vmatprep.subr.bf16.mxu1 %v1176_v25 }
 0x5ba   :  { %1117 = vmatpush3.bf16.msra.mxu0 %v1177_v26  ;;  %1139 = vmatpush3.bf16.msra.mxu1 %v1178_v27 }
 0x5bb   :  { %1118 = vmatprep.subr.bf16.mxu0 %v1179_v30  ;;  %1140 = vmatprep.subr.bf16.mxu1 %v1180_v31 }
 0x5be   :  { %1119 = vmatpush3.bf16.msra.mxu0 %v1181_v32  ;;  %1141 = vmatpush3.bf16.msra.mxu1 %v1182_v33 }
 0x5bf   :  { %1120 = vmatprep.subr.bf16.mxu0 %v1183_v34  ;;  %1142 = vmatprep.subr.bf16.mxu1 %v1184_v35 }
 0x5c2   :  { %1121 = vmatpush3.bf16.msra.mxu0 %v1185_v20  ;;  %1143 = vmatpush3.bf16.msra.mxu1 %v1186_v44 }
 0x5c3   :  { %1122 = vmatprep.subr.bf16.mxu0 %v1187_v50  ;;  %1144 = vmatprep.subr.bf16.mxu1 %v1188_v51 }
 0x5c6   :  { %1123 = vmatpush3.bf16.msra.mxu0 %v1189_v28  ;;  %1145 = vmatpush3.bf16.msra.mxu1 %v1190_v53 }
 0x5c7   :  { %1124 = vmatprep.subr.bf16.mxu0 %v1191_v54  ;;  %1146 = vmatprep.subr.bf16.mxu1 %v1192_v55 }
 0x5ca   :  { %1125 = vmatpush3.bf16.msra.mxu0 %v1193_v56  ;;  %1147 = vmatpush3.bf16.msra.mxu1 %v1194_v4 }
 0x680   :  { %v1503_v29 = vpop.f32.mrb[8].mxu0  ;;  %v1505_v39 = vpop.f32.mrb[8].mxu1 }
 0x681   :  { %v663_v43 = vmul.f32 %v1503_v29, %v1503_v29  ;;  %v1509_v57 = vpop.f32.mrb[9].mxu0  ;;  %v1511_v58 = vpop.f32.mrb[9].mxu1  ;;  %v665_v61 = vmul.f32 %v1505_v39, %v1505_v39 }
 0x682   :  { %v658_v59 = vadd.f32 %v1509_v57, %v1503_v29  ;;  %v664_v60 = vmul.f32 %v1509_v57, %v1509_v57  ;;  %v614_v62 = vpop.f32.mrb[10].mxu0  ;;  %v655_v63 = vpop.f32.mrb[10].mxu1  ;;  %v666_v7 = vmul.f32 %v1511_v58, %v1511_v58 }
 0x683   :  { %v615_v0 = vpop.f32.mrb[11].mxu0  ;;  %v656_v2 = vpop.f32.mrb[11].mxu1 }
 0x684   :  { %v659_v3 = vadd.f32 %v658_v59, %v1505_v39  ;;  %v667_v5 = vadd.f32 %v664_v60, %v663_v43 }
 0x686   :  { %v660_v6 = vadd.f32 %v659_v3, %v1511_v58  ;;  %v668_v8 = vadd.f32 %v667_v5, %v665_v61 }
 0x688   :  { %661 = vadd.xlane.f32.xlu0 %v660_v6  ;;  %v669_v1 = vadd.f32 %v668_v8, %v666_v7 }
 0x68a   :  { %670 = vadd.xlane.f32.xlu1 %v669_v1 }
 0x715   :  { %v662_v36 = vpop.xlane.xlu0 %661 }
 0x716   :  { %v672_v37 = vmul.f32 0.001953125, %v662_v36 }
 0x717   :  { %v671_v21 = vpop.xlane.xlu1 %670 }
 0x718   :  { %v674_v38 = vmul.f32 %v672_v37, %v672_v37  ;;  %v673_v41 = vmul.f32 0.001953125, %v671_v21 }
 0x71a   :  { %v675_v42 = vsub.f32 %v673_v41, %v674_v38 }
 0x71c   :  { %v677_v45 = vadd.f32 1e-05, %v675_v42 }
 0x71e   :  { %1199 = vrsqrt.f32 %v677_v45 }
 0x728   :  { %v1200_v47 = vpop.eup %1199 }
 0x729   :  { %v679_v48 = vmul.f32 %v1200_v47, %v676_v46 }
 0x72b   :  { %685 = vperm.xlu0 %1157, %v679_v48   ;;  %v681_v49 = vmul.f32 %v679_v48, %v672_v37 }
 0x72d   :  { %v682_v52 = vsub.f32 %v680_v40, %v681_v49 }
 0x72f   :  { %694 = vperm.xlu1 %1158, %v682_v52  }
 0x7aa   :  { %v686_v10 = vpop.permute.xlu0 %685 }
 0x7ab   :  { %v688_v43 = vmul.f32 %v686_v10, %v1503_v29  ;;  %v689_v59 = vmul.f32 %v686_v10, %v1509_v57  ;;  %v690_v60 = vmul.f32 %v686_v10, %v1505_v39  ;;  %v691_v61 = vmul.f32 %v686_v10, %v1511_v58 }
 0x7ae   :  { %v695_v62 = vpop.permute.xlu1 %694 }
 0x7af   :  { %v697_v63 = vadd.f32 %v695_v62, %v688_v43  ;;  %v698_v0 = vadd.f32 %v695_v62, %v689_v59  ;;  %v699_v2 = vadd.f32 %v695_v62, %v690_v60  ;;  %v700_v3 = vadd.f32 %v695_v62, %v691_v61 }
 0x7b1   :  { %v701_v5 = vmax.f32 %v697_v63, 0.0  ;;  %v702_v6 = vmax.f32 %v698_v0, 0.0  ;;  %v703_v7 = vmax.f32 %v699_v2, 0.0  ;;  %v704_v8 = vmax.f32 %v700_v3, 0.0 }
 0x7b3   :  { %705 = vst [vmem:[%s1658_s14] sm:$0xff] %v701_v5  ;;  %706 = vst [vmem:[%s1658_s14 + $0x8] sm:$0xff] %v702_v6  ;;  %v709_v29 = vpack.c.bf16 %v701_v5, %v701_v5  ;;  %v711_v39 = vpack.c.bf16 %v703_v7, %v703_v7  ;;  %v710_v57 = vpack.c.bf16 %v702_v6, %v702_v6 }
 0x7b4   :  { %707 = vst [vmem:[%s1658_s14 + $0x10] sm:$0xff] %v703_v7  ;;  %708 = vst [vmem:[%s1658_s14 + $0x18] sm:$0xff] %v704_v8  ;;  %v712_v58 = vpack.c.bf16 %v704_v8, %v704_v8 }
 0x7b5   :  { %1001 = vmatprep.mubr.bf16.mxu0 %v710_v57 }
 0x7b6   :  { %1041 = vmatprep.mubr.bf16.mxu1 %v712_v58  ;;  %1002 = vmatmul.mubr.bf16.vlgmr.msra.gmra.mrb[12].mxu0 %v709_v29 }
 0x7b7   :  { %1042 = vmatmul.mubr.bf16.vlgmr.msra.gmra.mrb[12].mxu1 %v711_v39 }
 0x889   :  { %v1126_v1 = vpop.f32.mrb[12].mxu0 }
 0x88a   :  { %v1148_v9 = vpop.f32.mrb[12].mxu1  ;;  %v1127_v11 = vpop.f32.mrb[13].mxu0 }
 0x88b   :  { %v1149_v12 = vpop.f32.mrb[13].mxu1  ;;  %v1128_v13 = vadd.f32 %v1127_v11, %v1126_v1  ;;  %v1129_v15 = vpop.f32.mrb[14].mxu0 }
 0x88c   :  { %v1150_v14 = vadd.f32 %v1149_v12, %v1148_v9  ;;  %v1151_v16 = vpop.f32.mrb[14].mxu1  ;;  %v1130_v17 = vpop.f32.mrb[15].mxu0 }
 0x88d   :  { %v1152_v18 = vpop.f32.mrb[15].mxu1 }
 0x88e   :  { %v1044_v19 = vadd.f32 %v1150_v14, %v1128_v13 }
 0x890   :  { %1049 = vst [vmem:[%s1659_s15] sm:$0xff] %v1044_v19 }

</bundles_post_ra>
